<compile_context>
chip_gen: v5e
topology: v5e:2x2
jax: 0.10.0
libtpu: 0.0.40
codegen_flags: <defaults>
</compile_context>

<pallas_src>
import functools

import jax
import jax.numpy as jnp
from jax.experimental import pallas as pl
from jax.experimental.pallas import tpu as pltpu

_LANE = 128
_MIB = 1024 * 1024


def _round_up(x, m):
    return ((x + m - 1) // m) * m


def _largest_tile(n, cap):
    """Largest multiple of 128 that divides n (n itself a 128-multiple), <= cap."""
    best = _LANE
    t = _LANE
    top = min(cap, n)
    while t <= top:
        if n % t == 0:
            best = t
        t += _LANE
    return best


# ----------------------- Stage 1: feature projection -----------------------
def _proj_kernel(seq_ref, wt_ref, fts_ref):
    # seq_ref: (blk_r, in_ft) row tile, wt_ref: (in_ft, f_p) resident,
    # fts_ref: (blk_r, f_p) row tile of the projected features (bf16 storage).
    fts_ref[...] = jnp.dot(
        seq_ref[...], wt_ref[...],
        preferred_element_type=jnp.float32).astype(fts_ref.dtype)


# ------------------ Stage 2: aggregation + bias + PReLU --------------------
def _agg_kernel(adj_ref, fts_ref, bias_ref, alpha_ref, out_ref, acc_ref, *,
                blk_k, resident):
    # adj_ref: (blk_r, blk_k) tile (i, k)
    # fts_ref: resident -> (n_p, f_p) whole array (DMA'd once); else (blk_k, f_p)
    # bias_ref: (1, f_p), alpha_ref: SMEM (1,), acc_ref: (blk_r, f_p) f32 scratch.
    k = pl.program_id(1)

    if resident:
        k0 = pl.multiple_of(k * blk_k, blk_k)
        fts = fts_ref[pl.ds(k0, blk_k), :]
    else:
        fts = fts_ref[...]

    # bf16 fts is promoted to f32; accumulation stays f32.
    partial = jnp.dot(adj_ref[...], fts, preferred_element_type=jnp.float32)

    @pl.when(k == 0)
    def _():
        # direct write: saves a (blk_r, f_p) zero-fill + read-modify pass
        acc_ref[...] = partial

    @pl.when(k != 0)
    def _():
        acc_ref[...] += partial

    @pl.when(k == pl.num_programs(1) - 1)
    def _():
        alpha = alpha_ref[0]                       # PReLU slope (SMEM scalar)
        out = acc_ref[...] + bias_ref[...]
        out = jnp.where(out > 0, out, alpha * out)
        out_ref[...] = out.astype(out_ref.dtype)


def gcn_forward(seq, adj, wt, bias, alpha, *, block=512,
                resident_fts_budget=16 * _MIB):
    """out = PReLU(adj @ (seq @ wt) + bias).

    seq  : (N, in_ft)       node features
    adj  : (N, N)           dense adjacency
    wt   : (in_ft, out_ft)  Linear weight, pre-transposed
    bias : (out_ft,)
    alpha: scalar PReLU slope
    """
    N, in_ft = seq.shape
    out_ft = wt.shape[1]
    dtype = seq.dtype

    # Fine-grained padding: node count to the 128-lane boundary (<=127 wasted
    # rows, not a full 512 block), feature dim to 128 for unmasked vst.
    n_p = _round_up(N, _LANE)
    f_p = _round_up(out_ft, _LANE)

    # Row tile: keep >= 2 row tiles when possible so the 'parallel' axis can
    # shard across both v7x TensorCores.  K tile: biggest 128-multiple divisor.
    blk_r = _largest_tile(n_p, max(_LANE, min(block, n_p // 2)))
    blk_k = _largest_tile(n_p, max(_LANE, block))

    # Projected features stored in bf16 (exact f32 accumulation everywhere).
    fts_dtype = jnp.bfloat16 if dtype == jnp.float32 else dtype
    fts_item = jnp.dtype(fts_dtype).itemsize

    # Zero-pad to tile boundaries. Padded adj cols x zero fts rows contribute 0;
    # padded output rows / feature cols are sliced off at the end.
    seq_p = jnp.pad(seq, ((0, n_p - N), (0, 0))) if n_p != N else seq
    adj_p = jnp.pad(adj, ((0, n_p - N), (0, n_p - N))) if n_p != N else adj
    wt_p = jnp.pad(wt, ((0, 0), (0, f_p - out_ft))) if f_p != out_ft else wt
    bias_p = jnp.pad(bias.reshape(1, out_ft), ((0, 0), (0, f_p - out_ft)))
    alpha_arr = jnp.asarray(alpha, jnp.float32).reshape(1)

    fts_bytes = n_p * f_p * fts_item
    adj_item = jnp.dtype(adj_p.dtype).itemsize
    out_item = jnp.dtype(dtype).itemsize

    # Keep seq_fts resident in VMEM for the whole Stage-2 call when it fits a
    # v7x-safe budget (assume the pipeline may hold 2 copies); else stream it.
    resident = fts_bytes <= resident_fts_budget

    # Gen-aware VMEM sizing: request exactly what the plan needs + headroom.
    # Worst case (16 MiB resident fts) stays < 48 MiB, safe on v7x's 64 MiB.
    need2 = (2 * blk_r * blk_k * adj_item            # adj double buffer
             + 2 * blk_r * f_p * out_item            # out double buffer
             + blk_r * f_p * 4                       # f32 accumulator
             + (2 * fts_bytes if resident else 2 * blk_k * f_p * fts_item)
             + 2 * f_p * 4)                          # bias
    vmem2 = max(32 * _MIB, need2 + 8 * _MIB)

    need1 = (2 * blk_r * in_ft * out_item
             + 2 * in_ft * f_p * jnp.dtype(wt_p.dtype).itemsize
             + 2 * blk_r * f_p * fts_item)
    vmem1 = max(32 * _MIB, need1 + 8 * _MIB)

    cparams_1d = pltpu.CompilerParams(
        dimension_semantics=("parallel",), vmem_limit_bytes=vmem1)
    cparams_2d = pltpu.CompilerParams(
        dimension_semantics=("parallel", "arbitrary"), vmem_limit_bytes=vmem2)

    # -------- Stage 1: seq_fts = seq @ Wt (computed once, bf16 storage) -----
    seq_fts = pl.pallas_call(
        _proj_kernel,
        out_shape=jax.ShapeDtypeStruct((n_p, f_p), fts_dtype),
        grid_spec=pltpu.PrefetchScalarGridSpec(
            num_scalar_prefetch=0,
            grid=(n_p // blk_r,),
            in_specs=[
                pl.BlockSpec((blk_r, in_ft), lambda i: (i, 0)),   # seq row tile
                pl.BlockSpec((in_ft, f_p), lambda i: (0, 0)),     # Wt (resident)
            ],
            out_specs=pl.BlockSpec((blk_r, f_p), lambda i: (i, 0)),
        ),
        compiler_params=cparams_1d,
    )(seq_p, wt_p)

    # ------ Stage 2: out = PReLU(adj @ seq_fts + bias), K-tiled ------
    if resident:
        # Full-array block, constant index_map -> DMA'd into VMEM exactly once
        # (no re-streaming per row tile).
        fts_spec = pl.BlockSpec((n_p, f_p), lambda i, k: (0, 0))
    else:
        fts_spec = pl.BlockSpec((blk_k, f_p), lambda i, k: (k, 0))

    agg = functools.partial(_agg_kernel, blk_k=blk_k, resident=resident)

    out_p = pl.pallas_call(
        agg,
        out_shape=jax.ShapeDtypeStruct((n_p, f_p), dtype),
        grid_spec=pltpu.PrefetchScalarGridSpec(
            num_scalar_prefetch=0,
            grid=(n_p // blk_r, n_p // blk_k),          # (row tiles, K tiles)
            in_specs=[
                pl.BlockSpec((blk_r, blk_k), lambda i, k: (i, k)),   # adj tile
                fts_spec,                                            # seq_fts
                pl.BlockSpec((1, f_p), lambda i, k: (0, 0)),         # bias
                pl.BlockSpec(memory_space=pltpu.MemorySpace.SMEM),   # alpha
            ],
            out_specs=pl.BlockSpec((blk_r, f_p), lambda i, k: (i, 0)),
            scratch_shapes=[pltpu.VMEM((blk_r, f_p), jnp.float32)],
        ),
        compiler_params=cparams_2d,
    )(adj_p, seq_fts, bias_p, alpha_arr)

    return out_p[:N, :out_ft]


def xavier_uniform(key, shape):
    # torch.nn.init.xavier_uniform_ on a (out_ft, in_ft) Linear weight.
    fan_out, fan_in = shape
    limit = float(jnp.sqrt(6.0 / (fan_in + fan_out)))
    return jax.random.uniform(key, shape, jnp.float32, -limit, limit)


if __name__ == "__main__":
    key = jax.random.PRNGKey(0)
    k_seq, k_adj, k_w = jax.random.split(key, 3)

    N, in_ft, out_ft = 16, 8, 32

    seq = jax.random.normal(k_seq, (N, in_ft), jnp.float32)
    adj = jax.random.uniform(k_adj, (N, N), jnp.float32)
    # row-normalize adjacency (typical GCN preprocessing; keeps values sane)
    adj = adj / jnp.sum(adj, axis=-1, keepdims=True)

    # Parameters (deterministic init matching the module's __init__)
    w = xavier_uniform(k_w, (out_ft, in_ft))       # nn.Linear weight (out, in)
    wt = w.T                                       # pre-transposed for the kernel
    bias = jnp.zeros((out_ft,), jnp.float32)       # bias.data.fill_(0.0)
    alpha = 0.25                                   # nn.PReLU default slope

    out = gcn_forward(seq, adj, wt, bias, alpha)
    out = jax.block_until_ready(out)

    # Pure-JAX reference mirroring the kernel's bf16 intermediate storage
    # (accumulations in f32 / HIGHEST precision).
    hi = jax.lax.Precision.HIGHEST
    fts_ref = jnp.dot(seq, wt, precision=hi).astype(jnp.bfloat16).astype(jnp.float32)
    ref = jnp.dot(adj, fts_ref, precision=hi) + bias[None, :]
    ref = jnp.where(ref > 0, ref, alpha * ref)

    assert out.shape == (N, out_ft)
    assert jnp.allclose(out, ref, atol=1e-2, rtol=1e-2), (
        float(jnp.max(jnp.abs(out - ref))))

    print("KERNEL_OK")
</pallas_src>

<mosaic_0001>
module attributes {stable_mosaic.version = 11 : i64} {
  func.func @_proj_kernel(%arg0: i32, %arg1: memref<128x8xf32, #tpu.memory_space<vmem>>, %arg2: memref<8x128xf32, #tpu.memory_space<vmem>>, %arg3: memref<128x128xbf16, #tpu.memory_space<vmem>>) attributes {dimension_semantics = [#tpu.dimension_semantics<parallel>], iteration_bounds = array<i64: 1>, scalar_prefetch = 0 : i64, scratch_operands = 0 : i64, tpu.core_type = #tpu.core_type<tc>, window_params = [{transform_indices = @transform_0, window_bounds = array<i64: 128, 8>}, {pipeline_mode = #tpu.pipeline_mode<synchronous>, transform_indices = @transform_1, window_bounds = array<i64: 8, 128>}, {transform_indices = @transform_2, window_bounds = array<i64: 128, 128>}]} {
    %c0 = arith.constant 0 : index
    %c0_0 = arith.constant 0 : index
    %0 = vector.load %arg1[%c0, %c0_0] : memref<128x8xf32, #tpu.memory_space<vmem>>, vector<128x8xf32>
    %c0_1 = arith.constant 0 : index
    %c0_2 = arith.constant 0 : index
    %1 = vector.load %arg2[%c0_1, %c0_2] : memref<8x128xf32, #tpu.memory_space<vmem>>, vector<8x128xf32>
    %cst = arith.constant dense<0.000000e+00> : vector<128x128xf32>
    %2 = tpu.matmul %0, %1, %cst {dimension_numbers = #tpu.dot_dimension_numbers<[1], [0], [0], [1], [0, 0, 1, 1], [], []>} : vector<128x8xf32>, vector<8x128xf32>, vector<128x128xf32> -> vector<128x128xf32>
    %3 = arith.truncf %2 : vector<128x128xf32> to vector<128x128xbf16>
    %c0_3 = arith.constant 0 : index
    %c0_4 = arith.constant 0 : index
    %4 = vector.load %arg3[%c0_3, %c0_4] : memref<128x128xbf16, #tpu.memory_space<vmem>>, vector<128x128xbf16>
    tpu.vector_store %arg3[%c0_3, %c0_4], %3 {strides = array<i32>} : memref<128x128xbf16, #tpu.memory_space<vmem>>, vector<128x128xbf16>,
    return
  }
  func.func @transform_0(%arg0: i32) -> (i32, i32) {
    %c0_i32 = arith.constant 0 : i32
    %c0_i32_0 = arith.constant 0 : i32
    return %arg0, %c0_i32 : i32, i32
  }
  func.func @transform_1(%arg0: i32) -> (i32, i32) {
    %c0_i32 = arith.constant 0 : i32
    %c0_i32_0 = arith.constant 0 : i32
    %c0_i32_1 = arith.constant 0 : i32
    return %c0_i32, %c0_i32_0 : i32, i32
  }
  func.func @transform_2(%arg0: i32) -> (i32, i32) {
    %c0_i32 = arith.constant 0 : i32
    %c0_i32_0 = arith.constant 0 : i32
    return %arg0, %c0_i32 : i32, i32
  }
}

</mosaic_0001>

<bundles_post_ra>
// kernel: tpu_custom_call.1
= control target key start
LH: loop header
LB: loop body
LE: loop exit
PB: predicated region body
PF: predicated region fallthrough
CT: control target
= control target key end

     0   :  { %vm29_vm0 = vcmask 64512   ;;  %s376_s0 = inlined_call_operand.vmem [shape: f32[128,8], index: 0, kind: input, shape index: {}]   ;;  %s377_s1 = inlined_call_operand.vmem [shape: f32[8,128], index: 1, kind: input, shape index: {}]   ;;  %s378_s2 = inlined_call_operand.hbm [shape: bf16[128,128], index: 2, kind: output, shape index: {}]  }
   0x1   :  { %v28_v0 = vld [vmem:[%s377_s1] sm:$0xff] }
   0x2   :  { %v12_v1 = vld [vmem:[%s376_s0] sm:$0xff]  ;;  %93 = vmatpush.msra.mxu0 %v28_v0  ;;  %256 = vmatpush.msra.mxu1 %v28_v0 }
   0x3   :  { %v16_v2 = vld [vmem:[%s376_s0 + $0x20] sm:$0xff]  ;;  %257 = vmatpush.msra.mxu2 %v28_v0  ;;  %258 = vmatpush.msra.mxu3 %v28_v0 }
   0x4   :  { %v20_v3 = vld [vmem:[%s376_s0 + $0x40] sm:$0xff]  ;;  %193 = vmatmul.msk.f32.vlgmr.msra.gmra.mxu0 %vm29_vm0, %v12_v1  ;;  %197 = vmatmul.msk.f32.vlgmr.msra.gmra.mxu1 %vm29_vm0, %v16_v2 }
   0x5   :  { %v24_v4 = vld [vmem:[%s376_s0 + $0x60] sm:$0xff]  ;;  %201 = vmatmul.msk.f32.vlgmr.msra.gmra.mxu2 %vm29_vm0, %v20_v3 }
   0x6   :  { %205 = vmatmul.msk.f32.vlgmr.msra.gmra.mxu3 %vm29_vm0, %v24_v4 }
   0x7   :  { %7 = vsyncpa [#allocation3], 0  ;;  %v13_v5 = vld [vmem:[%s376_s0 + $0x8] sm:$0xff]  ;;  %v14_v9 = vld [vmem:[%s376_s0 + $0x10] sm:$0xff]  ;;  %s181_s17 = sshll.u32 %s378_s2, 4  ;;  %s289_s18 = smov 64   ;;  %s182_s17 = int_to_ptr.hbm [resolvable:$true] %s181_s17 }
   0x8   :  { %v17_v6 = vld [vmem:[%s376_s0 + $0x28] sm:$0xff]  ;;  %v18_v10 = vld [vmem:[%s376_s0 + $0x30] sm:$0xff]  ;;  %v15_v13 = vld [vmem:[%s376_s0 + $0x18] sm:$0xff]  ;;  %s290_s1 = smov 4  }
   0x9   :  { %v21_v7 = vld [vmem:[%s376_s0 + $0x48] sm:$0xff]  ;;  %v22_v11 = vld [vmem:[%s376_s0 + $0x50] sm:$0xff]  ;;  %v19_v14 = vld [vmem:[%s376_s0 + $0x38] sm:$0xff] }
   0xa   :  { %v25_v8 = vld [vmem:[%s376_s0 + $0x68] sm:$0xff]  ;;  %v26_v12 = vld [vmem:[%s376_s0 + $0x70] sm:$0xff]  ;;  %v23_v15 = vld [vmem:[%s376_s0 + $0x58] sm:$0xff] }
   0xb   :  { %v27_v16 = vld [vmem:[%s376_s0 + $0x78] sm:$0xff]  ;;  %s288_s0 = smov [#allocation2]  }
   0xc   :  { %194 = vmatmul.msk.f32.gmra.mxu0 %vm29_vm0, %v13_v5  ;;  %198 = vmatmul.msk.f32.gmra.mxu1 %vm29_vm0, %v17_v6  ;;  %s179_s14 = sshll.u32 %s288_s0, 4  ;;  %s180_s14 = int_to_ptr.vmem [resolvable:$true] %s179_s14 }
   0xd   :  { %202 = vmatmul.msk.f32.gmra.mxu2 %vm29_vm0, %v21_v7 }
   0xe   :  { %206 = vmatmul.msk.f32.gmra.mxu3 %vm29_vm0, %v25_v8 }
  0x14   :  { %195 = vmatmul.msk.f32.gmra.mxu0 %vm29_vm0, %v14_v9  ;;  %199 = vmatmul.msk.f32.gmra.mxu1 %vm29_vm0, %v18_v10 }
  0x15   :  { %203 = vmatmul.msk.f32.gmra.mxu2 %vm29_vm0, %v22_v11 }
  0x16   :  { %207 = vmatmul.msk.f32.gmra.mxu3 %vm29_vm0, %v26_v12 }
  0x1c   :  { %196 = vmatmul.msk.f32.gmra.mxu0 %vm29_vm0, %v15_v13  ;;  %200 = vmatmul.msk.f32.gmra.mxu1 %vm29_vm0, %v19_v14 }
  0x1d   :  { %204 = vmatmul.msk.f32.gmra.mxu2 %vm29_vm0, %v23_v15 }
  0x1e   :  { %208 = vmatmul.msk.f32.gmra.mxu3 %vm29_vm0, %v27_v16 }
  0x81   :  { %v95_v17 = vpop.f32.mrf.mxu0  ;;  %v107_v18 = vpop.f32.mrf.mxu1 }
  0x88   :  { %v119_v19 = vpop.f32.mrf.mxu2 }
  0x89   :  { %v131_v20 = vpop.f32.mrf.mxu3  ;;  %v98_v21 = vpop.f32.mrf.mxu0 }
  0x8a   :  { %v110_v22 = vpop.f32.mrf.mxu1  ;;  %v212_v23 = vpack.c.bf16 %v98_v21, %v95_v17 }
  0x8b   :  { %v222_v24 = vpack.c.bf16 %v110_v22, %v107_v18 }
  0x8c   :  { %213 = vst [vmem:[#allocation2] sm:$0xff] %v212_v23  }
  0x8d   :  { %250 = vst [vmem:[#allocation2 + $0x10] sm:$0xff] %v222_v24  }
  0x90   :  { %v122_v25 = vpop.f32.mrf.mxu2 }
  0x91   :  { %v134_v26 = vpop.f32.mrf.mxu3  ;;  %v232_v27 = vpack.c.bf16 %v122_v25, %v119_v19  ;;  %v101_v29 = vpop.f32.mrf.mxu0 }
  0x92   :  { %v242_v28 = vpack.c.bf16 %v134_v26, %v131_v20  ;;  %v113_v30 = vpop.f32.mrf.mxu1 }
  0x93   :  { %252 = vst [vmem:[#allocation2 + $0x20] sm:$0xff] %v232_v27  }
  0x94   :  { %254 = vst [vmem:[#allocation2 + $0x30] sm:$0xff] %v242_v28  }
  0x98   :  { %v125_v31 = vpop.f32.mrf.mxu2 }
  0x99   :  { %v137_v32 = vpop.f32.mrf.mxu3  ;;  %v104_v33 = vpop.f32.mrf.mxu0 }
  0x9a   :  { %v116_v34 = vpop.f32.mrf.mxu1  ;;  %v217_v35 = vpack.c.bf16 %v104_v33, %v101_v29 }
  0x9b   :  { %v227_v36 = vpack.c.bf16 %v116_v34, %v113_v30 }
  0x9c   :  { %249 = vst [vmem:[#allocation2 + $0x8] sm:$0xff] %v217_v35  }
  0x9d   :  { %251 = vst [vmem:[#allocation2 + $0x18] sm:$0xff] %v227_v36  }
  0xa0   :  { %v128_v37 = vpop.f32.mrf.mxu2 }
  0xa1   :  { %v140_v38 = vpop.f32.mrf.mxu3  ;;  %v237_v39 = vpack.c.bf16 %v128_v37, %v125_v31 }
  0xa2   :  { %v247_v40 = vpack.c.bf16 %v140_v38, %v137_v32 }
  0xa3   :  { %253 = vst [vmem:[#allocation2 + $0x28] sm:$0xff] %v237_v39  }
  0xa4   :  { %255 = vst [vmem:[#allocation2 + $0x38] sm:$0xff] %v247_v40  }
  0xa5   :  { %187 = dma.vmem_to_hbm [thread:$0]  %s180_s14, 1024, %s182_s17, [#allocation3], %s289_s18, %s289_s18, %s290_s1  }
  0xa6   :  { %286 = dma.done.wait [#allocation3], 1024  }
  0xa7   :  { %287 = vsyncadd [#allocation3], 4294966272 }
  0xa8   :  { %192 = vsyncpa [#allocation3], 1 }

</bundles_post_ra>
